<compile_context>
chip_gen: v7x
topology: tpu7x:2x2x1
jax: 0.10.0
libtpu: 0.0.40
codegen_flags: <defaults>
</compile_context>

<pallas_src>
import functools

import jax
import jax.numpy as jnp
import numpy as np
from jax import lax
from jax.experimental import pallas as pl
from jax.experimental.pallas import tpu as pltpu

# ----------------------------- module configuration -----------------------------
width_mult_list = [0.67, 1]
REPARAM_OFFSET = 2.0 ** -18
BETA_MIN = 1e-6
GAMMA_INIT = 0.1
PEDESTAL = REPARAM_OFFSET ** 2
BETA_BOUND = (BETA_MIN + PEDESTAL) ** 0.5
GAMMA_BOUND = REPARAM_OFFSET


# ------------------------- generation-aware VMEM budgets -------------------------
def _derive_vmem_budgets():
    """Scoped-VMEM limit and tile budget per TPU generation.

    v5e/v6e: 128 MiB physical VMEM -> ~96 MiB scoped limit, 72 MiB tile budget.
    v7x:      64 MiB physical VMEM -> ~48 MiB scoped limit, 36 MiB tile budget.
    Falls back to conservative known-safe values if the hardware query fails.
    """
    try:
        phys = int(pltpu.get_tpu_info().vmem_capacity_bytes)
    except Exception:
        return 32 * 1024 * 1024, 24 * 1024 * 1024
    limit = max(24 * 1024 * 1024, min(96 * 1024 * 1024, (phys * 3) // 4))
    return limit, (limit * 3) // 4


_VMEM_LIMIT_BYTES, _VMEM_TILE_BUDGET = _derive_vmem_budgets()


# --------------------------------- Pallas kernel --------------------------------
def _gdn_kernel(x_ref, gamma_ref, beta_ref, o_ref):
    """One (spatial-tile, image) block of GDN.

    x_ref:     (C, TM)  input tile, channel on sublanes / spatial on lanes
    gamma_ref: (C, C)   reparameterized gamma (1x1-conv weight, out x in), f32, resident
    beta_ref:  (C, 1)   reparameterized beta (bias), f32, resident
    o_ref:     (C, TM)  output tile
    """
    x = x_ref[...].astype(jnp.float32)   # cast BEFORE squaring (matches f32 reference)
    x2 = x * x
    gamma = gamma_ref[...]
    C = gamma_ref.shape[0]

    if C <= 8:
        # Tiny channel count: a (C,C)@(C,TM) matmul wastes the MXU; do C unrolled
        # outer-product multiply-adds on the VPU instead.
        norm = gamma[:, 0:1] * x2[0:1, :]
        for j in range(1, C):
            norm = norm + gamma[:, j:j + 1] * x2[j:j + 1, :]
    else:
        # norm[c, m] = sum_j gamma[c, j] * x[j, m]^2   (the 1x1 conv on the MXU)
        norm = jnp.dot(gamma, x2, preferred_element_type=jnp.float32)

    norm = norm + beta_ref[...]
    # NOTE: on masked tail tiles the out-of-bounds lanes may hold garbage -> NaN/Inf
    # locally; safe because stores are masked and nothing reduces across lanes.
    o_ref[...] = (x * lax.rsqrt(norm)).astype(o_ref.dtype)


def _pick_tile_m(hw, n, c, itemsize, requested):
    """Choose the spatial (lane) tile size.

    Live VMEM per grid step ~= double-buffered in + out tiles (2*2*C*tm*itemsize)
    plus ~3 f32 temporaries of shape (C, tm) inside the body (x_f32, x**2, norm),
    i.e. roughly C * (4*itemsize + 12) bytes per lane.
    """
    bytes_per_lane = c * (4 * itemsize + 12)
    cap = max(128, (_VMEM_TILE_BUDGET // bytes_per_lane) // 128 * 128)
    tm = max(128, (min(int(requested), cap) // 128) * 128)
    if n == 1:
        # v7x has 2 TensorCores per chip: with a single image, make the spatial axis
        # provide at least 2 grid blocks so both cores get work. Harmless on v5e/v6e.
        tm = min(tm, max(128, ((pl.cdiv(hw, 2) + 127) // 128) * 128))
    return tm


@functools.partial(jax.jit, static_argnames=("tile_m",))
def switchable_gdn_forward(x_nchw, beta_param, gamma_param, *, tile_m=8192):
    """SwitchableGDN.forward: applies the GDN selected by width_mult == max(width_mult_list)."""
    # ---- parameter reparameterization (tiny; plain-JAX glue) ----
    beta = jnp.maximum(beta_param, BETA_BOUND) ** 2 - PEDESTAL        # (C,)
    gamma = jnp.maximum(gamma_param, GAMMA_BOUND) ** 2 - PEDESTAL     # (C, C)

    N, C, H, W = x_nchw.shape
    HW = H * W
    x = x_nchw.reshape(N, C, HW)          # free view: NCHW is already channel-major per image

    tm = _pick_tile_m(HW, N, C, x.dtype.itemsize, tile_m)

    if HW % 128 != 0 and HW <= tm:
        # Small odd-sized image: pad the spatial axis to a lane-aligned width so output
        # stores stay unmasked (mainly helps v5e's single vector-store slot). Zero lanes
        # give norm = beta > 0, so no NaNs leak; the pad is sliced off after the call.
        M = ((HW + 127) // 128) * 128
        x = jnp.pad(x, ((0, 0), (0, 0), (0, M - HW)))
    else:
        M = HW
    if M % 128 == 0:
        tm = min(tm, M)

    grid = (pl.cdiv(M, tm), N)   # spatial axis first: abundant axis for megacore when N == 1

    cost = pl.CostEstimate(
        flops=2 * N * C * C * M,
        transcendentals=N * C * M,                                    # one rsqrt per output elem
        bytes_accessed=2 * N * C * M * x.dtype.itemsize + 4 * C * C + 4 * C,
    )

    out = pl.pallas_call(
        _gdn_kernel,
        out_shape=jax.ShapeDtypeStruct((N, C, M), x_nchw.dtype),
        grid=grid,
        in_specs=[
            pl.BlockSpec((None, C, tm), lambda i, n: (n, 0, i)),   # x tile (N squeezed)
            pl.BlockSpec((C, C), lambda i, n: (0, 0)),             # gamma (resident)
            pl.BlockSpec((C, 1), lambda i, n: (0, 0)),             # beta  (resident)
        ],
        out_specs=pl.BlockSpec((None, C, tm), lambda i, n: (n, 0, i)),
        compiler_params=pltpu.CompilerParams(
            dimension_semantics=("parallel", "parallel"),
            vmem_limit_bytes=_VMEM_LIMIT_BYTES,
        ),
        cost_estimate=cost,
    )(x, gamma.astype(jnp.float32), beta[:, None].astype(jnp.float32))

    if M != HW:
        out = out[:, :, :HW]
    return out.reshape(N, C, H, W)        # free view back to NCHW


# ------------------------- deterministic parameter init -------------------------
def init_switchable_gdn_params(num_features_list):
    """Replicates SwitchableGDN.__init__: one GDN per entry; returns params of the
    GDN selected in forward() (width_mult = max -> matching index of width_mult_list)."""
    idx = width_mult_list.index(max(width_mult_list))
    ch = num_features_list[idx]
    # GDN.__init__ (deterministic): beta = sqrt(1 + pedestal), gamma = sqrt(gamma_init*I + pedestal)
    beta_param = np.sqrt(np.ones((ch,), np.float32) + PEDESTAL)
    gamma_param = np.sqrt(GAMMA_INIT * np.eye(ch, dtype=np.float32) + PEDESTAL)
    return jnp.asarray(beta_param), jnp.asarray(gamma_param), ch


# ------------------------------ pure-JAX reference -------------------------------
def _reference_gdn(x_nchw, beta_param, gamma_param):
    beta = jnp.maximum(beta_param, BETA_BOUND) ** 2 - PEDESTAL
    gamma = jnp.maximum(gamma_param, GAMMA_BOUND) ** 2 - PEDESTAL
    x2 = x_nchw.astype(jnp.float32) ** 2
    norm = jnp.einsum("nchw,oc->nohw", x2, gamma) + beta[None, :, None, None]
    return (x_nchw.astype(jnp.float32) / jnp.sqrt(norm)).astype(x_nchw.dtype)


if __name__ == "__main__":
    key = jax.random.PRNGKey(0)
    ks = jax.random.split(key, 9)

    def _check(n, c, h, w, kb, kg, kx):
        num_features_list = [max(2, int(round(c * 0.67))), c]   # slimmable channel counts
        beta_p, gamma_p, C = init_switchable_gdn_params(num_features_list)
        # Perturb away from the diagonal init (stays positive) so the cross-channel
        # 1x1-conv mixing is actually exercised by the numeric check.
        beta_p = beta_p + 0.2 * jax.random.uniform(kb, beta_p.shape, dtype=jnp.float32)
        gamma_p = gamma_p + 0.1 * jax.random.uniform(kg, gamma_p.shape, dtype=jnp.float32)

        x = jax.random.normal(kx, (n, C, h, w), dtype=jnp.float32)   # NCHW, like PyTorch
        y = jax.block_until_ready(switchable_gdn_forward(x, beta_p, gamma_p))
        y_ref = _reference_gdn(x, beta_p, gamma_p)
        assert y.shape == x.shape and y.dtype == x.dtype
        np.testing.assert_allclose(np.asarray(y), np.asarray(y_ref), rtol=1e-5, atol=1e-5)

    _check(2, 4, 16, 16, ks[0], ks[1], ks[2])    # tiny C -> VPU path, batch fills one grid axis
    _check(1, 16, 16, 16, ks[3], ks[4], ks[5])   # N=1 -> forced spatial split (v7x), MXU path
    _check(1, 16, 10, 10, ks[6], ks[7], ks[8])   # odd HW -> lane-aligned pad path

    print("KERNEL_OK")
</pallas_src>

<mosaic_0001>
module attributes {stable_mosaic.version = 11 : i64} {
  func.func @_gdn_kernel(%arg0: i32, %arg1: i32, %arg2: memref<1x4x256xf32, #tpu.memory_space<vmem>>, %arg3: memref<4x4xf32, #tpu.memory_space<vmem>>, %arg4: memref<4x1xf32, #tpu.memory_space<vmem>>, %arg5: memref<1x4x256xf32, #tpu.memory_space<vmem>>) attributes {dimension_semantics = [#tpu.dimension_semantics<parallel>, #tpu.dimension_semantics<parallel>], iteration_bounds = array<i64: 1, 2>, scalar_prefetch = 0 : i64, scratch_operands = 0 : i64, tpu.core_type = #tpu.core_type<tc>, window_params = [{transform_indices = @transform_0, window_bounds = array<i64: 1, 4, 256>}, {pipeline_mode = #tpu.pipeline_mode<synchronous>, transform_indices = @transform_1, window_bounds = array<i64: 4, 4>}, {pipeline_mode = #tpu.pipeline_mode<synchronous>, transform_indices = @transform_2, window_bounds = array<i64: 4, 1>}, {transform_indices = @transform_3, window_bounds = array<i64: 1, 4, 256>}]} {
    %c0 = arith.constant 0 : index
    %c0_0 = arith.constant 0 : index
    %c0_1 = arith.constant 0 : index
    %0 = vector.load %arg2[%c0, %c0_0, %c0_1] : memref<1x4x256xf32, #tpu.memory_space<vmem>>, vector<1x4x256xf32>
    %1 = vector.shape_cast %0 : vector<1x4x256xf32> to vector<4x256xf32>
    %2 = arith.mulf %1, %1 : vector<4x256xf32>
    %c0_2 = arith.constant 0 : index
    %c0_3 = arith.constant 0 : index
    %3 = vector.load %arg3[%c0_2, %c0_3] : memref<4x4xf32, #tpu.memory_space<vmem>>, vector<4x4xf32>
    %4 = vector.extract_strided_slice %3 {offsets = [0, 0], sizes = [4, 1], strides = [1, 1]} : vector<4x4xf32> to vector<4x1xf32>
    %5 = vector.extract_strided_slice %2 {offsets = [0, 0], sizes = [1, 256], strides = [1, 1]} : vector<4x256xf32> to vector<1x256xf32>
    %6 = vector.broadcast %4 : vector<4x1xf32> to vector<4x256xf32>
    %7 = vector.broadcast %5 : vector<1x256xf32> to vector<4x256xf32>
    %8 = arith.mulf %6, %7 : vector<4x256xf32>
    %9 = vector.extract_strided_slice %3 {offsets = [0, 1], sizes = [4, 1], strides = [1, 1]} : vector<4x4xf32> to vector<4x1xf32>
    %10 = vector.extract_strided_slice %2 {offsets = [1, 0], sizes = [1, 256], strides = [1, 1]} : vector<4x256xf32> to vector<1x256xf32>
    %11 = vector.broadcast %9 : vector<4x1xf32> to vector<4x256xf32>
    %12 = vector.broadcast %10 : vector<1x256xf32> to vector<4x256xf32>
    %13 = arith.mulf %11, %12 : vector<4x256xf32>
    %14 = arith.addf %8, %13 : vector<4x256xf32>
    %15 = vector.extract_strided_slice %3 {offsets = [0, 2], sizes = [4, 1], strides = [1, 1]} : vector<4x4xf32> to vector<4x1xf32>
    %16 = vector.extract_strided_slice %2 {offsets = [2, 0], sizes = [1, 256], strides = [1, 1]} : vector<4x256xf32> to vector<1x256xf32>
    %17 = vector.broadcast %15 : vector<4x1xf32> to vector<4x256xf32>
    %18 = vector.broadcast %16 : vector<1x256xf32> to vector<4x256xf32>
    %19 = arith.mulf %17, %18 : vector<4x256xf32>
    %20 = arith.addf %14, %19 : vector<4x256xf32>
    %21 = vector.extract_strided_slice %3 {offsets = [0, 3], sizes = [4, 1], strides = [1, 1]} : vector<4x4xf32> to vector<4x1xf32>
    %22 = vector.extract_strided_slice %2 {offsets = [3, 0], sizes = [1, 256], strides = [1, 1]} : vector<4x256xf32> to vector<1x256xf32>
    %23 = vector.broadcast %21 : vector<4x1xf32> to vector<4x256xf32>
    %24 = vector.broadcast %22 : vector<1x256xf32> to vector<4x256xf32>
    %25 = arith.mulf %23, %24 : vector<4x256xf32>
    %26 = arith.addf %20, %25 : vector<4x256xf32>
    %c0_4 = arith.constant 0 : index
    %c0_5 = arith.constant 0 : index
    %27 = vector.load %arg4[%c0_4, %c0_5] : memref<4x1xf32, #tpu.memory_space<vmem>>, vector<4x1xf32>
    %28 = vector.broadcast %27 : vector<4x1xf32> to vector<4x256xf32>
    %29 = arith.addf %26, %28 : vector<4x256xf32>
    %30 = math.rsqrt %29 : vector<4x256xf32>
    %31 = arith.mulf %1, %30 : vector<4x256xf32>
    %c0_6 = arith.constant 0 : index
    %c0_7 = arith.constant 0 : index
    %c0_8 = arith.constant 0 : index
    %32 = vector.load %arg5[%c0_6, %c0_7, %c0_8] : memref<1x4x256xf32, #tpu.memory_space<vmem>>, vector<1x4x256xf32>
    %33 = vector.shape_cast %32 : vector<1x4x256xf32> to vector<4x256xf32>
    %34 = vector.shape_cast %31 : vector<4x256xf32> to vector<1x4x256xf32>
    tpu.vector_store %arg5[%c0_6, %c0_7, %c0_8], %34 {strides = array<i32>} : memref<1x4x256xf32, #tpu.memory_space<vmem>>, vector<1x4x256xf32>,
    return
  }
  func.func @transform_0(%arg0: i32, %arg1: i32) -> (i32, i32, i32) {
    %c0_i32 = arith.constant 0 : i32
    %c0_i32_0 = arith.constant 0 : i32
    return %arg1, %c0_i32, %arg0 : i32, i32, i32
  }
  func.func @transform_1(%arg0: i32, %arg1: i32) -> (i32, i32) {
    %c0_i32 = arith.constant 0 : i32
    %c0_i32_0 = arith.constant 0 : i32
    %c0_i32_1 = arith.constant 0 : i32
    return %c0_i32, %c0_i32_0 : i32, i32
  }
  func.func @transform_2(%arg0: i32, %arg1: i32) -> (i32, i32) {
    %c0_i32 = arith.constant 0 : i32
    %c0_i32_0 = arith.constant 0 : i32
    %c0_i32_1 = arith.constant 0 : i32
    return %c0_i32, %c0_i32_0 : i32, i32
  }
  func.func @transform_3(%arg0: i32, %arg1: i32) -> (i32, i32, i32) {
    %c0_i32 = arith.constant 0 : i32
    %c0_i32_0 = arith.constant 0 : i32
    return %arg1, %c0_i32, %arg0 : i32, i32, i32
  }
}

</mosaic_0001>

<bundles_post_ra>
// kernel: switchable_gdn_forward.1
= control target key start
LH: loop header
LB: loop body
LE: loop exit
PB: predicated region body
PF: predicated region fallthrough
CT: control target
= control target key end

     0   :  { %s519_s12 = smov 0   ;;  %s521_s13 = smov 0   ;;  %s565_s0 = inlined_call_operand.vmem [shape: f32[2,4,256], index: 0, kind: input, shape index: {}]   ;;  %s566_s1 = inlined_call_operand.vmem [shape: f32[4,4], index: 1, kind: input, shape index: {}]   ;;  %s567_s2 = inlined_call_operand.vmem [shape: f32[4,1], index: 2, kind: input, shape index: {}]   ;;  %s568_s3 = inlined_call_operand.vmem [shape: f32[2,4,256], index: 3, kind: output, shape index: {}]  }
   0x1   :  { %s523_s14 = smov 0  }
   0x2 LB: > { %s22_s15 = sadd.s32 1, %s489_s13  ;;  %p424_p0 = scmp.ge.s32.totalorder %s493_s14, 1  ;;  %s493_s14 = sphi %s523_s14, %s13_s14   ;;  %s489_s13 = sphi %s521_s13, %s570_s13   ;;  %s485_s12 = sphi %s519_s12, %s569_s12  }
   0x3   : > { %p23_p1 = scmp.ge.s32.totalorder %s22_s15, 2  ;;  %p158_p2 = scmp.lt.s32.totalorder %s493_s14, 3 }
   0x5   : > { %s572_s15 = smov (%p23_p1, %s22_s15), 0  ;;  %p159_p3 = pnand %p424_p0, %p158_p2 }
   0x6   : > { %v212_v0 = vld [vmem:[%s566_s1] sm:$0xf] (!%p159_p3)  ;;  %v495_v1 = vmov (!%p159_p3), 0   ;;  %v496_v2 = vmov (!%p159_p3), 2   ;;  %v497_v3 = vmov (!%p159_p3), 1   ;;  %v498_v4 = vmov (!%p159_p3), 3  }
   0x7   : > { %162 = sbr.rel (%p159_p3) target bundleno = 168 (0xa8), region = 32  ;;  %461 = vset.pattern.permute.xlu0 (!%p159_p3), %v495_v1  ;;  %463 = vset.pattern.permute.xlu1 (!%p159_p3), %v496_v2  ;;  %v317_v5 = vld [vmem:[%s567_s2] sm:$0xf] (!%p159_p3)  ;;  %p191_p4 = scmp.lt.s32.totalorder (!%p159_p3), %s485_s12, 1  ;;  %v219_v6 = vlaneseq (!%p159_p3) }
   0x8   : > { %215 = vperm.xlu0 (!%p159_p3), %461, %v212_v0   ;;  %266 = vperm.xlu1 (!%p159_p3), %463, %v212_v0  }
   0x9   : > { %v220_v7 = vshrl.u32 (!%p159_p3), %v219_v6, 7 }
   0xb   : > { %v221_v9 = vsub.s32 (!%p159_p3), 0, %v220_v7  ;;  %v225_v10 = vsub.s32 (!%p159_p3), 4, %v220_v7  ;;  %v245_v12 = vsub.s32 (!%p159_p3), 1, %v220_v7  ;;  %v249_v13 = vsub.s32 (!%p159_p3), 5, %v220_v7 }
   0xc   : > { %462 = vset.pattern.permute.xlu0 (!%p159_p3), %v497_v3  ;;  %464 = vset.pattern.permute.xlu1 (!%p159_p3), %v498_v4  ;;  %v271_v14 = vsub.s32 (!%p159_p3), 2, %v220_v7  ;;  %v275_v15 = vsub.s32 (!%p159_p3), 6, %v220_v7  ;;  %v297_v16 = vsub.s32 (!%p159_p3), 3, %v220_v7  ;;  %v301_v17 = vsub.s32 (!%p159_p3), 7, %v220_v7 }
   0xd   : > { %240 = vperm.xlu0 (!%p159_p3), %462, %v212_v0   ;;  %292 = vperm.xlu1 (!%p159_p3), %464, %v212_v0  }
   0xe   : > { %s574_s12 = smov (!%p191_p4, %s485_s12), 1 }
   0xf   : > { %s431_s20 = sshll.u32 %s574_s12, 3 }
  0x10   : > { %s198_s23 = scalar_lea.vmem %s565_s0, %s431_s20  ;;  %s208_s26 = scalar_lea.vmem %s568_s3, %s431_s20 }
  0x11   : > { %465 = vset.pattern.permute.xlu1 %v495_v1  ;;  %466 = vset.pattern.permute.xlu0 %v495_v1  ;;  %v210_v8 = vld [vmem:[%s198_s23] sm:$0xff] }
  0x12   : > { %320 = vperm.xlu1 %465, %v317_v5   ;;  %v211_v11 = vmul.f32 %v210_v8, %v210_v8 }
  0x14   : > { %v222_v18 = vrot.slane %v211_v11, %v221_v9  ;;  %v226_v19 = vrot.slane %v211_v11, %v225_v10  ;;  %v246_v20 = vrot.slane %v211_v11, %v245_v12  ;;  %v250_v21 = vrot.slane %v211_v11, %v249_v13 }
  0x15   : > { %v272_v22 = vrot.slane %v211_v11, %v271_v14  ;;  %v276_v23 = vrot.slane %v211_v11, %v275_v15  ;;  %v298_v26 = vrot.slane %v211_v11, %v297_v16  ;;  %v302_v27 = vrot.slane %v211_v11, %v301_v17 }
  0x16   : > { %v232_v28 = vrot.slane %v222_v18, %v221_v9  ;;  %v236_v29 = vrot.slane %v226_v19, %v221_v9  ;;  %v256_v30 = vrot.slane %v246_v20, %v245_v12  ;;  %v260_v31 = vrot.slane %v250_v21, %v245_v12 }
  0x17   : > { %v282_v32 = vrot.slane %v272_v22, %v271_v14  ;;  %v286_v33 = vrot.slane %v276_v23, %v271_v14  ;;  %v308_v34 = vrot.slane %v298_v26, %v297_v16  ;;  %v312_v35 = vrot.slane %v302_v27, %v297_v16 }
  0x87   : > { %v216_v24 = vpop.permute.xlu0 %215  ;;  %v267_v25 = vpop.permute.xlu1 %266 }
  0x88   : > { %v237_v38 = vmul.f32 %v232_v28, %v216_v24  ;;  %v238_v39 = vmul.f32 %v236_v29, %v216_v24  ;;  %v287_v42 = vmul.f32 %v282_v32, %v267_v25  ;;  %v288_v43 = vmul.f32 %v286_v33, %v267_v25 }
  0x8c   : > { %v241_v36 = vpop.permute.xlu0 %240  ;;  %v293_v37 = vpop.permute.xlu1 %292 }
  0x8d   : > { %v261_v40 = vmul.f32 %v256_v30, %v241_v36  ;;  %v262_v41 = vmul.f32 %v260_v31, %v241_v36  ;;  %v313_v46 = vmul.f32 %v308_v34, %v293_v37  ;;  %v314_v47 = vmul.f32 %v312_v35, %v293_v37 }
  0x8f   : > { %v263_v44 = vadd.f32 %v261_v40, %v237_v38  ;;  %v264_v45 = vadd.f32 %v262_v41, %v238_v39 }
  0x91   : > { %v289_v48 = vadd.f32 %v287_v42, %v263_v44  ;;  %v290_v49 = vadd.f32 %v288_v43, %v264_v45  ;;  %v321_v50 = vpop.permute.xlu1 %320 }
  0x93   : > { %v315_v51 = vadd.f32 %v313_v46, %v289_v48  ;;  %v316_v52 = vadd.f32 %v314_v47, %v290_v49 }
  0x95   : > { %v323_v53 = vadd.f32 %v321_v50, %v315_v51  ;;  %v324_v54 = vadd.f32 %v321_v50, %v316_v52 }
  0x97   : > { %467 = vrsqrt.f32 %v323_v53 }
  0x98   : > { %469 = vrsqrt.f32 %v324_v54 }
  0xa1   : > { %v468_v55 = vpop.eup %467 }
  0xa2   : > { %v470_v56 = vpop.eup %469 }
  0xa3   : > { %v329_v57 = vcombine.low %v468_v55, %v470_v56 }
  0xa5   : > { %v331_v58 = vmul.f32 %v329_v57, %v210_v8 }
  0xa7   : > { %332 = vst [vmem:[%s208_s26] sm:$0xff] %v331_v58 }
  0xa8 PF: > { %s13_s14 = sadd.s32 1, %s493_s14   ;;  %s569_s12 = smov %s489_s13 }
  0xa9   : > { %p10_p5 = scmp.ge.s32.totalorder %s13_s14, 4   ;;  %s570_s13 = smov %s572_s15 }
  0xab   :  { %12 = sbr.rel (!%p10_p5) target bundleno = 2 (0x2), region = 62 }

</bundles_post_ra>
